<compile_context>
chip_gen: v7x
topology: tpu7x:2x2x1
jax: 0.10.0
libtpu: 0.0.40
codegen_flags: <defaults>
</compile_context>

<pallas_src>
import numpy as np
import jax
import jax.numpy as jnp
from jax.experimental import pallas as pl
from jax.experimental.pallas import tpu as pltpu


def make_dino_loss_kernel(out_dim, ncrops, B, center_momentum, world_size=1):
    # number of (iq, v) loss terms with v != iq
    n_loss_terms = 2 * ncrops - 2
    teacher_rows = 2 * B

    def kernel(params_ref, student_ref, teacher_ref, center_ref,
               loss_ref, newc_ref, q_sc, qsum_sc, acc_sc):
        v = pl.program_id(0)

        inv_student_temp = params_ref[0]   # 1 / student_temp
        inv_teacher_temp = params_ref[1]   # 1 / teacher_temp (epoch schedule)

        # ---- step 0: hoisted teacher softmax (both chunks), center EMA, init ----
        @pl.when(v == 0)
        def _():
            acc_sc[...] = jnp.zeros_like(acc_sc)

            t_raw = teacher_ref[...].astype(jnp.float32)                 # (2B, D)
            c = center_ref[...].astype(jnp.float32)                      # (1, D)
            t = (t_raw - c) * inv_teacher_temp
            t = t - jnp.max(t, axis=-1, keepdims=True)
            et = jnp.exp(t)
            # exact (non-approx) reciprocal: the loss rearrangement relies on
            # each teacher softmax row summing to 1.
            q = et * pl.reciprocal(jnp.sum(et, axis=-1, keepdims=True),
                                   approx=False)
            q_sc[...] = q
            qsum_sc[...] = q[:B, :] + q[B:, :]

            # center update: EMA of teacher batch mean.
            # TODO(synk): dist.all_reduce over devices not modeled; world_size=1.
            batch_center = jnp.sum(t_raw, axis=0, keepdims=True) * (
                1.0 / float(teacher_rows * world_size))
            newc_ref[...] = (c * center_momentum
                             + batch_center * (1.0 - center_momentum))

        # ---- student log-softmax pieces for this crop (one pass per crop) ----
        s = student_ref[...].astype(jnp.float32) * inv_student_temp      # (B, D)
        s_max = jnp.max(s, axis=-1, keepdims=True)
        logz = jnp.log(jnp.sum(jnp.exp(s - s_max), axis=-1,
                               keepdims=True)) + s_max                   # (B, 1)

        # sum_j(-q_j * logp_j) = logz - sum_j(q_j * s_j)   (since sum_j q_j == 1)
        @pl.when(v == 0)
        def _():  # crop 0 pairs only with teacher chunk 1
            q1 = q_sc[pl.ds(B, B), :]
            acc_sc[...] += logz - jnp.sum(q1 * s, axis=-1, keepdims=True)

        @pl.when(v == 1)
        def _():  # crop 1 pairs only with teacher chunk 0
            q0 = q_sc[pl.ds(0, B), :]
            acc_sc[...] += logz - jnp.sum(q0 * s, axis=-1, keepdims=True)

        @pl.when(v >= 2)
        def _():  # local crops: both teacher chunks share one log-softmax
            acc_sc[...] += (2.0 * logz
                            - jnp.sum(qsum_sc[...] * s, axis=-1, keepdims=True))

        # ---- finalize: single constant scale folds /B mean and /n_loss_terms ----
        @pl.when(v == pl.num_programs(0) - 1)
        def _():
            scale = 1.0 / float(B * n_loss_terms)
            loss_ref[...] = jnp.sum(acc_sc[...], axis=0, keepdims=True) * scale

    return kernel


def dino_loss_pallas(student_output, teacher_output, center, epoch, *,
                     out_dim, ncrops, warmup_teacher_temp, teacher_temp,
                     warmup_teacher_temp_epochs, nepochs,
                     student_temp=0.1, center_momentum=0.9):
    """Returns (total_loss scalar, new_center (1, out_dim))."""
    assert student_output.shape[0] % ncrops == 0
    B = student_output.shape[0] // ncrops
    assert teacher_output.shape == (2 * B, out_dim)

    # teacher temperature schedule (plain numpy glue, same as the PyTorch module)
    schedule = np.concatenate((
        np.linspace(warmup_teacher_temp, teacher_temp, warmup_teacher_temp_epochs),
        np.ones(nepochs - warmup_teacher_temp_epochs) * teacher_temp))
    temp = float(schedule[epoch])

    # runtime scalars -> one compiled kernel serves every epoch of the schedule
    params = jnp.array([1.0 / student_temp, 1.0 / temp], dtype=jnp.float32)

    kernel = make_dino_loss_kernel(out_dim, ncrops, B, center_momentum)

    loss, new_center = pl.pallas_call(
        kernel,
        out_shape=(jax.ShapeDtypeStruct((1, 1), jnp.float32),
                   jax.ShapeDtypeStruct((1, out_dim), jnp.float32)),
        grid_spec=pltpu.PrefetchScalarGridSpec(
            num_scalar_prefetch=0,
            grid=(ncrops,),
            in_specs=[
                pl.BlockSpec(memory_space=pltpu.MemorySpace.SMEM),     # temps
                pl.BlockSpec((B, out_dim), lambda v: (v, 0)),          # student crop v
                pl.BlockSpec((2 * B, out_dim), lambda v: (0, 0)),      # teacher (resident)
                pl.BlockSpec((1, out_dim), lambda v: (0, 0)),          # center (resident)
            ],
            out_specs=[
                pl.BlockSpec((1, 1), lambda v: (0, 0)),                # loss
                pl.BlockSpec((1, out_dim), lambda v: (0, 0)),          # new center
            ],
            scratch_shapes=[
                pltpu.VMEM((2 * B, out_dim), jnp.float32),             # teacher q
                pltpu.VMEM((B, out_dim), jnp.float32),                 # q0 + q1
                pltpu.VMEM((B, 1), jnp.float32),                       # per-row loss acc
            ],
        ),
        compiler_params=pltpu.CompilerParams(
            dimension_semantics=("arbitrary",),
            vmem_limit_bytes=32 * 1024 * 1024),
        # TODO(synk): at production out_dim (~65536) the lane axis must be tiled
        # (especially on v7x's 64 MiB VMEM); demo shapes fit a single block.
    )(params, student_output, teacher_output, center)

    return loss[0, 0], new_center


def dino_loss_ref(student_output, teacher_output, center, epoch, *,
                  out_dim, ncrops, warmup_teacher_temp, teacher_temp,
                  warmup_teacher_temp_epochs, nepochs,
                  student_temp=0.1, center_momentum=0.9):
    """Pure-JAX reference mirroring the PyTorch forward (world_size=1)."""
    B = student_output.shape[0] // ncrops
    schedule = np.concatenate((
        np.linspace(warmup_teacher_temp, teacher_temp, warmup_teacher_temp_epochs),
        np.ones(nepochs - warmup_teacher_temp_epochs) * teacher_temp))
    temp = float(schedule[epoch])

    s = student_output / student_temp
    s_chunks = jnp.split(s, ncrops, axis=0)
    t = jax.nn.softmax((teacher_output - center) / temp, axis=-1)
    t_chunks = jnp.split(t, 2, axis=0)

    total, n = 0.0, 0
    for iq, q in enumerate(t_chunks):
        for v in range(ncrops):
            if v == iq:
                continue
            logp = jax.nn.log_softmax(s_chunks[v], axis=-1)
            total += jnp.mean(jnp.sum(-q * logp, axis=-1))
            n += 1
    total = total / n

    batch_center = jnp.sum(teacher_output, axis=0, keepdims=True) / (2 * B)
    new_center = center * center_momentum + batch_center * (1 - center_momentum)
    return total, new_center


if __name__ == "__main__":
    out_dim = 128
    ncrops = 4
    B = 8
    warmup_teacher_temp = 0.04
    teacher_temp = 0.07
    warmup_teacher_temp_epochs = 2
    nepochs = 10

    key = jax.random.PRNGKey(0)
    k1, k2 = jax.random.split(key)
    student_output = jax.random.normal(k1, (ncrops * B, out_dim), dtype=jnp.float32)
    teacher_output = jax.random.normal(k2, (2 * B, out_dim), dtype=jnp.float32)
    center = jnp.zeros((1, out_dim), dtype=jnp.float32)  # buffer init, like PyTorch

    cfg = dict(out_dim=out_dim, ncrops=ncrops,
               warmup_teacher_temp=warmup_teacher_temp, teacher_temp=teacher_temp,
               warmup_teacher_temp_epochs=warmup_teacher_temp_epochs,
               nepochs=nepochs, student_temp=0.1, center_momentum=0.9)

    ok = True
    for epoch in (0, 3):   # warmup temp and plateau temp exercise the schedule
        loss, new_center = dino_loss_pallas(student_output, teacher_output,
                                            center, epoch, **cfg)
        loss = jax.block_until_ready(loss)
        new_center = jax.block_until_ready(new_center)

        loss_ref, new_center_ref = dino_loss_ref(student_output, teacher_output,
                                                 center, epoch, **cfg)
        np.testing.assert_allclose(np.asarray(loss), np.asarray(loss_ref),
                                   rtol=1e-5, atol=1e-5)
        np.testing.assert_allclose(np.asarray(new_center),
                                   np.asarray(new_center_ref),
                                   rtol=1e-5, atol=1e-5)

    if ok:
        print("KERNEL_OK")
</pallas_src>

<mosaic_0001>
module attributes {stable_mosaic.version = 11 : i64} {
  func.func @kernel(%arg0: i32, %arg1: memref<2xf32, #tpu.memory_space<smem>>, %arg2: memref<8x128xf32, #tpu.memory_space<vmem>>, %arg3: memref<16x128xf32, #tpu.memory_space<vmem>>, %arg4: memref<1x128xf32, #tpu.memory_space<vmem>>, %arg5: memref<1x1xf32, #tpu.memory_space<vmem>>, %arg6: memref<1x128xf32, #tpu.memory_space<vmem>>, %arg7: memref<16x128xf32, #tpu.memory_space<vmem>>, %arg8: memref<8x128xf32, #tpu.memory_space<vmem>>, %arg9: memref<8x1xf32, #tpu.memory_space<vmem>>) attributes {dimension_semantics = [#tpu.dimension_semantics<arbitrary>], iteration_bounds = array<i64: 4>, scalar_prefetch = 0 : i64, scratch_operands = 3 : i64, tpu.core_type = #tpu.core_type<tc>, window_params = [{transform_indices = @transform_0, window_bounds = array<i64: 2>}, {transform_indices = @transform_1, window_bounds = array<i64: 8, 128>}, {pipeline_mode = #tpu.pipeline_mode<synchronous>, transform_indices = @transform_2, window_bounds = array<i64: 16, 128>}, {pipeline_mode = #tpu.pipeline_mode<synchronous>, transform_indices = @transform_3, window_bounds = array<i64: 1, 128>}, {pipeline_mode = #tpu.pipeline_mode<synchronous>, transform_indices = @transform_4, window_bounds = array<i64: 1, 1>}, {pipeline_mode = #tpu.pipeline_mode<synchronous>, transform_indices = @transform_5, window_bounds = array<i64: 1, 128>}]} {
    %c0 = arith.constant 0 : index
    %0 = memref.load %arg1[%c0] : memref<2xf32, #tpu.memory_space<smem>>
    %c1 = arith.constant 1 : index
    %1 = memref.load %arg1[%c1] : memref<2xf32, #tpu.memory_space<smem>>
    %c0_i32 = arith.constant 0 : i32
    %2 = arith.cmpi eq, %arg0, %c0_i32 : i32
    %3 = arith.extui %2 : i1 to i32
    %c0_i32_0 = arith.constant 0 : i32
    %4 = arith.cmpi ne, %3, %c0_i32_0 : i32
    scf.if %4 {
      %cst_9 = arith.constant 0.000000e+00 : f32
      %29 = vector.broadcast %cst_9 : f32 to vector<8x1xf32>
      %c0_10 = arith.constant 0 : index
      %c0_11 = arith.constant 0 : index
      %30 = vector.load %arg9[%c0_10, %c0_11] : memref<8x1xf32, #tpu.memory_space<vmem>>, vector<8x1xf32>
      tpu.vector_store %arg9[%c0_10, %c0_11], %29 {strides = array<i32>} : memref<8x1xf32, #tpu.memory_space<vmem>>, vector<8x1xf32>,
      %c0_12 = arith.constant 0 : index
      %c0_13 = arith.constant 0 : index
      %31 = vector.load %arg3[%c0_12, %c0_13] : memref<16x128xf32, #tpu.memory_space<vmem>>, vector<16x128xf32>
      %c0_14 = arith.constant 0 : index
      %c0_15 = arith.constant 0 : index
      %32 = vector.load %arg4[%c0_14, %c0_15] : memref<1x128xf32, #tpu.memory_space<vmem>>, vector<1x128xf32>
      %33 = vector.broadcast %32 : vector<1x128xf32> to vector<16x128xf32>
      %34 = arith.subf %31, %33 : vector<16x128xf32>
      %35 = vector.broadcast %1 : f32 to vector<16x128xf32>
      %36 = arith.mulf %34, %35 : vector<16x128xf32>
      %cst_16 = arith.constant dense<0xFF800000> : vector<16xf32>
      %37 = vector.multi_reduction <maximumf>, %36, %cst_16 [1] : vector<16x128xf32> to vector<16xf32>
      %38 = vector.shape_cast %37 : vector<16xf32> to vector<16x1xf32>
      %39 = vector.broadcast %38 : vector<16x1xf32> to vector<16x128xf32>
      %40 = arith.subf %36, %39 : vector<16x128xf32>
      %41 = math.exp %40 : vector<16x128xf32>
      %cst_17 = arith.constant dense<0.000000e+00> : vector<16xf32>
      %42 = vector.multi_reduction <add>, %41, %cst_17 [1] : vector<16x128xf32> to vector<16xf32>
      %43 = vector.shape_cast %42 : vector<16xf32> to vector<16x1xf32>
      %44 = tpu.reciprocal %43 : vector<16x1xf32> -> vector<16x1xf32>
      %45 = vector.broadcast %44 : vector<16x1xf32> to vector<16x128xf32>
      %46 = arith.mulf %41, %45 : vector<16x128xf32>
      %c0_18 = arith.constant 0 : index
      %c0_19 = arith.constant 0 : index
      %47 = vector.load %arg7[%c0_18, %c0_19] : memref<16x128xf32, #tpu.memory_space<vmem>>, vector<16x128xf32>
      tpu.vector_store %arg7[%c0_18, %c0_19], %46 {strides = array<i32>} : memref<16x128xf32, #tpu.memory_space<vmem>>, vector<16x128xf32>,
      %48 = vector.extract_strided_slice %46 {offsets = [0, 0], sizes = [8, 128], strides = [1, 1]} : vector<16x128xf32> to vector<8x128xf32>
      %49 = vector.extract_strided_slice %46 {offsets = [8, 0], sizes = [8, 128], strides = [1, 1]} : vector<16x128xf32> to vector<8x128xf32>
      %50 = arith.addf %48, %49 : vector<8x128xf32>
      %c0_20 = arith.constant 0 : index
      %c0_21 = arith.constant 0 : index
      %51 = vector.load %arg8[%c0_20, %c0_21] : memref<8x128xf32, #tpu.memory_space<vmem>>, vector<8x128xf32>
      tpu.vector_store %arg8[%c0_20, %c0_21], %50 {strides = array<i32>} : memref<8x128xf32, #tpu.memory_space<vmem>>, vector<8x128xf32>,
      %cst_22 = arith.constant dense<0.000000e+00> : vector<128xf32>
      %52 = vector.multi_reduction <add>, %31, %cst_22 [0] : vector<16x128xf32> to vector<128xf32>
      %53 = vector.shape_cast %52 : vector<128xf32> to vector<1x128xf32>
      %cst_23 = arith.constant 6.250000e-02 : f32
      %54 = vector.broadcast %cst_23 : f32 to vector<1x128xf32>
      %55 = arith.mulf %53, %54 : vector<1x128xf32>
      %cst_24 = arith.constant 0.899999976 : f32
      %56 = vector.broadcast %cst_24 : f32 to vector<1x128xf32>
      %57 = arith.mulf %32, %56 : vector<1x128xf32>
      %cst_25 = arith.constant 1.000000e-01 : f32
      %58 = vector.broadcast %cst_25 : f32 to vector<1x128xf32>
      %59 = arith.mulf %55, %58 : vector<1x128xf32>
      %60 = arith.addf %57, %59 : vector<1x128xf32>
      %c0_26 = arith.constant 0 : index
      %c0_27 = arith.constant 0 : index
      %61 = vector.load %arg6[%c0_26, %c0_27] : memref<1x128xf32, #tpu.memory_space<vmem>>, vector<1x128xf32>
      tpu.vector_store %arg6[%c0_26, %c0_27], %60 {strides = array<i32>} : memref<1x128xf32, #tpu.memory_space<vmem>>, vector<1x128xf32>,
    } else {
    }
    %c0_1 = arith.constant 0 : index
    %c0_2 = arith.constant 0 : index
    %5 = vector.load %arg2[%c0_1, %c0_2] : memref<8x128xf32, #tpu.memory_space<vmem>>, vector<8x128xf32>
    %6 = vector.broadcast %0 : f32 to vector<8x128xf32>
    %7 = arith.mulf %5, %6 : vector<8x128xf32>
    %cst = arith.constant dense<0xFF800000> : vector<8xf32>
    %8 = vector.multi_reduction <maximumf>, %7, %cst [1] : vector<8x128xf32> to vector<8xf32>
    %9 = vector.shape_cast %8 : vector<8xf32> to vector<8x1xf32>
    %10 = vector.broadcast %9 : vector<8x1xf32> to vector<8x128xf32>
    %11 = arith.subf %7, %10 : vector<8x128xf32>
    %12 = math.exp %11 : vector<8x128xf32>
    %cst_3 = arith.constant dense<0.000000e+00> : vector<8xf32>
    %13 = vector.multi_reduction <add>, %12, %cst_3 [1] : vector<8x128xf32> to vector<8xf32>
    %14 = vector.shape_cast %13 : vector<8xf32> to vector<8x1xf32>
    %15 = math.log %14 : vector<8x1xf32>
    %16 = arith.addf %15, %9 : vector<8x1xf32>
    %c0_i32_4 = arith.constant 0 : i32
    %17 = arith.cmpi eq, %arg0, %c0_i32_4 : i32
    %18 = arith.extui %17 : i1 to i32
    %c0_i32_5 = arith.constant 0 : i32
    %19 = arith.cmpi ne, %18, %c0_i32_5 : i32
    scf.if %19 {
      %c8 = arith.constant 8 : index
      %c0_9 = arith.constant 0 : index
      %29 = vector.load %arg7[%c8, %c0_9] : memref<16x128xf32, #tpu.memory_space<vmem>>, vector<8x128xf32>
      %c0_10 = arith.constant 0 : index
      %c0_11 = arith.constant 0 : index
      %30 = vector.load %arg9[%c0_10, %c0_11] : memref<8x1xf32, #tpu.memory_space<vmem>>, vector<8x1xf32>
      %31 = arith.mulf %29, %7 : vector<8x128xf32>
      %cst_12 = arith.constant dense<0.000000e+00> : vector<8xf32>
      %32 = vector.multi_reduction <add>, %31, %cst_12 [1] : vector<8x128xf32> to vector<8xf32>
      %33 = vector.shape_cast %32 : vector<8xf32> to vector<8x1xf32>
      %34 = arith.subf %16, %33 : vector<8x1xf32>
      %35 = arith.addf %30, %34 : vector<8x1xf32>
      %c0_13 = arith.constant 0 : index
      %c0_14 = arith.constant 0 : index
      %36 = vector.load %arg9[%c0_13, %c0_14] : memref<8x1xf32, #tpu.memory_space<vmem>>, vector<8x1xf32>
      tpu.vector_store %arg9[%c0_13, %c0_14], %35 {strides = array<i32>} : memref<8x1xf32, #tpu.memory_space<vmem>>, vector<8x1xf32>,
    } else {
    }
    %c1_i32 = arith.constant 1 : i32
    %20 = arith.cmpi eq, %arg0, %c1_i32 : i32
    %21 = arith.extui %20 : i1 to i32
    %c0_i32_6 = arith.constant 0 : i32
    %22 = arith.cmpi ne, %21, %c0_i32_6 : i32
    scf.if %22 {
      %c0_9 = arith.constant 0 : index
      %c0_10 = arith.constant 0 : index
      %29 = vector.load %arg7[%c0_9, %c0_10] : memref<16x128xf32, #tpu.memory_space<vmem>>, vector<8x128xf32>
      %c0_11 = arith.constant 0 : index
      %c0_12 = arith.constant 0 : index
      %30 = vector.load %arg9[%c0_11, %c0_12] : memref<8x1xf32, #tpu.memory_space<vmem>>, vector<8x1xf32>
      %31 = arith.mulf %29, %7 : vector<8x128xf32>
      %cst_13 = arith.constant dense<0.000000e+00> : vector<8xf32>
      %32 = vector.multi_reduction <add>, %31, %cst_13 [1] : vector<8x128xf32> to vector<8xf32>
      %33 = vector.shape_cast %32 : vector<8xf32> to vector<8x1xf32>
      %34 = arith.subf %16, %33 : vector<8x1xf32>
      %35 = arith.addf %30, %34 : vector<8x1xf32>
      %c0_14 = arith.constant 0 : index
      %c0_15 = arith.constant 0 : index
      %36 = vector.load %arg9[%c0_14, %c0_15] : memref<8x1xf32, #tpu.memory_space<vmem>>, vector<8x1xf32>
      tpu.vector_store %arg9[%c0_14, %c0_15], %35 {strides = array<i32>} : memref<8x1xf32, #tpu.memory_space<vmem>>, vector<8x1xf32>,
    } else {
    }
    %c2_i32 = arith.constant 2 : i32
    %23 = arith.cmpi sge, %arg0, %c2_i32 : i32
    %24 = arith.extui %23 : i1 to i32
    %c0_i32_7 = arith.constant 0 : i32
    %25 = arith.cmpi ne, %24, %c0_i32_7 : i32
    scf.if %25 {
      %c0_9 = arith.constant 0 : index
      %c0_10 = arith.constant 0 : index
      %29 = vector.load %arg9[%c0_9, %c0_10] : memref<8x1xf32, #tpu.memory_space<vmem>>, vector<8x1xf32>
      %cst_11 = arith.constant 2.000000e+00 : f32
      %30 = vector.broadcast %cst_11 : f32 to vector<8x1xf32>
      %31 = arith.mulf %30, %16 : vector<8x1xf32>
      %c0_12 = arith.constant 0 : index
      %c0_13 = arith.constant 0 : index
      %32 = vector.load %arg8[%c0_12, %c0_13] : memref<8x128xf32, #tpu.memory_space<vmem>>, vector<8x128xf32>
      %33 = arith.mulf %32, %7 : vector<8x128xf32>
      %cst_14 = arith.constant dense<0.000000e+00> : vector<8xf32>
      %34 = vector.multi_reduction <add>, %33, %cst_14 [1] : vector<8x128xf32> to vector<8xf32>
      %35 = vector.shape_cast %34 : vector<8xf32> to vector<8x1xf32>
      %36 = arith.subf %31, %35 : vector<8x1xf32>
      %37 = arith.addf %29, %36 : vector<8x1xf32>
      %c0_15 = arith.constant 0 : index
      %c0_16 = arith.constant 0 : index
      %38 = vector.load %arg9[%c0_15, %c0_16] : memref<8x1xf32, #tpu.memory_space<vmem>>, vector<8x1xf32>
      tpu.vector_store %arg9[%c0_15, %c0_16], %37 {strides = array<i32>} : memref<8x1xf32, #tpu.memory_space<vmem>>, vector<8x1xf32>,
    } else {
    }
    %c3_i32 = arith.constant 3 : i32
    %26 = arith.cmpi eq, %arg0, %c3_i32 : i32
    %27 = arith.extui %26 : i1 to i32
    %c0_i32_8 = arith.constant 0 : i32
    %28 = arith.cmpi ne, %27, %c0_i32_8 : i32
    scf.if %28 {
      %c0_9 = arith.constant 0 : index
      %c0_10 = arith.constant 0 : index
      %29 = vector.load %arg9[%c0_9, %c0_10] : memref<8x1xf32, #tpu.memory_space<vmem>>, vector<8x1xf32>
      %cst_11 = arith.constant dense<0.000000e+00> : vector<1xf32>
      %30 = vector.multi_reduction <add>, %29, %cst_11 [0] : vector<8x1xf32> to vector<1xf32>
      %31 = vector.shape_cast %30 : vector<1xf32> to vector<1x1xf32>
      %cst_12 = arith.constant 0.020833334 : f32
      %32 = vector.broadcast %cst_12 : f32 to vector<1x1xf32>
      %33 = arith.mulf %31, %32 : vector<1x1xf32>
      %c0_13 = arith.constant 0 : index
      %c0_14 = arith.constant 0 : index
      %34 = vector.load %arg5[%c0_13, %c0_14] : memref<1x1xf32, #tpu.memory_space<vmem>>, vector<1x1xf32>
      tpu.vector_store %arg5[%c0_13, %c0_14], %33 {strides = array<i32>} : memref<1x1xf32, #tpu.memory_space<vmem>>, vector<1x1xf32>,
    } else {
    }
    return
  }
  func.func @transform_0(%arg0: i32) -> i32 {
    %c0_i32 = arith.constant 0 : i32
    %c0_i32_0 = arith.constant 0 : i32
    return %c0_i32 : i32
  }
  func.func @transform_1(%arg0: i32) -> (i32, i32) {
    %c0_i32 = arith.constant 0 : i32
    %c0_i32_0 = arith.constant 0 : i32
    return %arg0, %c0_i32 : i32, i32
  }
  func.func @transform_2(%arg0: i32) -> (i32, i32) {
    %c0_i32 = arith.constant 0 : i32
    %c0_i32_0 = arith.constant 0 : i32
    %c0_i32_1 = arith.constant 0 : i32
    return %c0_i32, %c0_i32_0 : i32, i32
  }
  func.func @transform_3(%arg0: i32) -> (i32, i32) {
    %c0_i32 = arith.constant 0 : i32
    %c0_i32_0 = arith.constant 0 : i32
    %c0_i32_1 = arith.constant 0 : i32
    return %c0_i32, %c0_i32_0 : i32, i32
  }
  func.func @transform_4(%arg0: i32) -> (i32, i32) {
    %c0_i32 = arith.constant 0 : i32
    %c0_i32_0 = arith.constant 0 : i32
    %c0_i32_1 = arith.constant 0 : i32
    return %c0_i32, %c0_i32_0 : i32, i32
  }
  func.func @transform_5(%arg0: i32) -> (i32, i32) {
    %c0_i32 = arith.constant 0 : i32
    %c0_i32_0 = arith.constant 0 : i32
    %c0_i32_1 = arith.constant 0 : i32
    return %c0_i32, %c0_i32_0 : i32, i32
  }
}

</mosaic_0001>

<bundles_post_ra>
// kernel: tpu_custom_call.1
= control target key start
LH: loop header
LB: loop body
LE: loop exit
PB: predicated region body
PF: predicated region fallthrough
CT: control target
= control target key end

     0   :  { %11 = vsyncpa [#allocation8], 0  ;;  %s1039_s0 = inlined_call_operand.hbm [shape: f32[2], index: 0, kind: input, shape index: {}]   ;;  %s1040_s1 = inlined_call_operand.hbm [shape: f32[32,128], index: 1, kind: input, shape index: {}]   ;;  %s1041_s2 = inlined_call_operand.hbm [shape: f32[16,128], index: 2, kind: input, shape index: {}]   ;;  %s1042_s3 = inlined_call_operand.vmem [shape: f32[1,128], index: 3, kind: input, shape index: {}]   ;;  %s1043_s4 = inlined_call_operand.hbm [shape: f32[1,1], index: 4, kind: output, shape index: {0}]   ;;  %s1044_s5 = inlined_call_operand.hbm [shape: f32[1,128], index: 5, kind: output, shape index: {1}]  }
   0x1   :  { %12 = vsyncpa [#allocation6], 0 }
   0x2   :  { %14 = vsyncpa [#allocation6 + $0x1], 0 }
   0x3   :  { %15 = vsyncpa [#allocation11], 0 }
   0x4   :  { %16 = vsyncpa [#allocation7], 0 }
   0x5   :  { %17 = vsyncpa [#allocation14], 0  ;;  %s804_s18 = smov 0   ;;  %s806_s19 = smov 0  }
   0x6   :  { %s808_s20 = smov 0   ;;  %s810_s21 = smov 0  }
   0x7 LB: > { %s823_s22 = sadd.s32 4294967295, %s764_s21   ;;  %p64_p0 = scmp.ne.s32.totalorder %s756_s19, %s752_s18  ;;  %s764_s21 = sphi %s810_s21, %s1061_s21   ;;  %s760_s20 = sphi %s808_s20, %s1060_s20   ;;  %s756_s19 = sphi %s806_s19, %s1059_s19   ;;  %s752_s18 = sphi %s804_s18, %s1058_s18  }
   0x8   : > { %p1045_p1 = scmp.eq.s32.totalorder %s823_s22, 0  ;;  %p480_p2 = scmp.ge.s32.totalorder %s764_s21, 1 }
   0x9   : > { %p159_p3 = scmp.lt.s32.totalorder %s764_s21, 5  ;;  %s766_s25 = smov [#allocation10]  }
   0xa   : > { %p832_p5 = por %p1045_p1, %p64_p0  ;;  %s180_s26 = sshll.u32 %s766_s25, 4  ;;  %s842_s26 = int_to_ptr.vmem [resolvable:$true] %s180_s26 }
   0xb   : > { %p836_p6 = pnand %p480_p2, %p159_p3  ;;  %s851_s28 = sadd.s32 1, %s764_s21  }
   0xc   : > { %s1047_s23 = scalar_select %p832_p5, 1, 0 }
   0xd   : > { %p520_p7 = pneg %p836_p6  ;;  %s48_s29 = ssub.s32 %s764_s21, %s851_s28 }
   0xe   : > { %s591_s7 = scalar_lea.hbm %s1039_s0, 16 }
   0xf   : > { %p846_p8 = pnand %p520_p7, %p1045_p1  ;;  %p592_p9 = scmp.ne.s32.totalorder %s1039_s0, %s591_s7 }
  0x10   : > { %p598_p13 = scmp.lt.u32.totalorder %s591_s7, %s1039_s0 }
  0x11   : > { %p593_p10 = pneg %p846_p8 }
  0x13   : > { %p594_p11 = pnand %p593_p10, %p592_p9 }
  0x15   : > { %p595_p12 = pneg %p594_p11 }
  0x17   : > { %p600_p0 = pnand %p598_p13, %p595_p12 }
  0x19   : > { %603 = shalt.err (!%p600_p0)
}
  0x1a   : > { %s767_s12 = smov [#allocation5]   ;;  %s604_s17 = scalar_lea.hbm %s1041_s2, 256 }
  0x1b   : > { %523 = dma.hbm_to_smem (!%p846_p8), %s1039_s0, 16, %s767_s12, [#allocation8]  }
  0x1c   : > { %p605_p2 = scmp.ne.s32.totalorder %s1041_s2, %s604_s17  ;;  %p611_p9 = scmp.lt.u32.totalorder %s604_s17, %s1041_s2 }
  0x1e   : > { %p607_p3 = pnand %p605_p2, %p593_p10 }
  0x20   : > { %p608_p7 = pneg %p607_p3 }
  0x22   : > { %p613_p11 = pnand %p611_p9, %p608_p7 }
  0x24   : > { %616 = shalt.err (!%p613_p11)
}
  0x25   : > { %s617_s7 = scalar_lea.vmem %s842_s26, 256  ;;  %p625_p4 = scmp.lt.s32.totalorder %s842_s26, %s842_s26 }
  0x26   : > { %p618_p12 = scmp.ne.s32.totalorder %s842_s26, %s617_s7  ;;  %p626_p2 = scmp.lt.s32.totalorder %s617_s7, %s617_s7 }
  0x28   : > { %p620_p13 = pnand %p618_p12, %p593_p10  ;;  %p627_p3 = por %p626_p2, %p625_p4 }
  0x2a   : > { %p621_p0 = pneg %p620_p13 }
  0x2c   : > { %p628_p1 = pnand %p627_p3, %p621_p0 }
  0x2e   : > { %631 = shalt.err (!%p628_p1)
}
  0x2f   : > { %s768_s8 = smov 128   ;;  %s769_s9 = smov 8  }
  0x30   : > { %526 = dma.hbm_to_vmem [thread:$0]  (!%p846_p8), %s1041_s2, 256, %s842_s26, [#allocation11], %s768_s8, %s768_s8, %s769_s9  }
  0x31   : > { %p49_p1 = scmp.eq.s32.totalorder %s48_s29, 0  ;;  %s51_s12 = sadd.s32 1, %s760_s20 }
  0x32   : > { %p58_p4 = scmp.ne.s32.totalorder %s760_s20, %s756_s19  ;;  %p59_p10 = scmp.eq.s32.totalorder %s764_s21, 0 }
  0x33   : > { %s907_s13 = scalar_select %p49_p1, %s760_s20, %s51_s12  }
  0x34   : > { %p60_p7 = por %p59_p10, %p58_p4  ;;  %p533_p9 = scmp.lt.s32.totalorder %s764_s21, 4 }
  0x35   : > { %s197_s14 = sand.u32 1, %s760_s20   ;;  %s485_s15 = sshll.u32 %s764_s21, 7 }
  0x36   : > { %s484_s16 = sshll.u32 %s197_s14, 3  ;;  %s915_s27 = scalar_lea.hbm %s1040_s1, %s485_s15 }
  0x37   : > { %s201_s26 = scalar_lea.vmem [#allocation9], %s484_s16  ;;  %p917_p8 = pnand %p533_p9, %p60_p7 }
  0x38   : > { %s208_s29 = sshll.u32 %s201_s26, 4  ;;  %s198_s21 = scalar_lea.sflag [#allocation6], %s197_s14  ;;  %s921_s29 = int_to_ptr.vmem [resolvable:$true] %s208_s29 }
  0x39   : > { %s632_s30 = scalar_lea.hbm %s915_s27, 128  ;;  %p634_p12 = pneg %p917_p8 }
  0x3a   : > { %p633_p11 = scmp.ne.s32.totalorder %s915_s27, %s632_s30  ;;  %s637_s8 = scalar_lea.hbm %s1040_s1, 512 }
  0x3b   : > { %p638_p2 = scmp.lt.u32.totalorder %s915_s27, %s1040_s1  ;;  %p639_p3 = scmp.lt.u32.totalorder %s637_s8, %s632_s30 }
  0x3c   : > { %p635_p13 = pnand %p634_p12, %p633_p11  ;;  %p641_p4 = scmp.lt.u32.totalorder %s632_s30, %s915_s27 }
  0x3d   : > { %p640_p1 = por %p639_p3, %p638_p2 }
  0x3e   : > { %p636_p0 = pneg %p635_p13 }
  0x3f   : > { %p642_p10 = por %p641_p4, %p640_p1 }
  0x41   : > { %p643_p7 = pnand %p642_p10, %p636_p0 }
  0x43   : > { %646 = shalt.err (!%p643_p7)
}
  0x44   : > { %s647_s11 = scalar_lea.vmem %s921_s29, 128  ;;  %s770_s12 = smov [#allocation9]  }
  0x45   : > { %p648_p9 = scmp.ne.s32.totalorder %s921_s29, %s647_s11  ;;  %s652_s14 = sshll.u32 %s770_s12, 4  ;;  %s653_s14 = int_to_ptr.vmem [resolvable:$false] %s652_s14 }
  0x46   : > { %s654_s15 = scalar_lea.vmem %s653_s14, 256  ;;  %p655_p5 = scmp.lt.s32.totalorder %s921_s29, %s653_s14 }
  0x47   : > { %p650_p11 = pnand %p648_p9, %p634_p12  ;;  %p656_p2 = scmp.lt.s32.totalorder %s654_s15, %s647_s11 }
  0x49   : > { %p651_p13 = pneg %p650_p11  ;;  %p657_p3 = por %p656_p2, %p655_p5 }
  0x4b   : > { %p658_p1 = pnand %p657_p3, %p651_p13 }
  0x4d   : > { %661 = shalt.err (!%p658_p1)
}
  0x4e   : > { %530 = dma.hbm_to_vmem [thread:$0]  (!%p917_p8), %s915_s27, 128, %s921_s29, %s198_s21  }
  0x4f   : > { %217 = sbr.rel (%p836_p6) target bundleno = 1124 (0x464), region = 36  ;;  %p1051_p12 = scmp.eq.s32.totalorder (!%p836_p6), %s823_s22, 0 }
  0x56   : > { %731 = dma.done.wait (%p1051_p12), [#allocation8], 16   ;;  %p1052_p0 = pmov %p1051_p12 }
  0x57   : > { %s223_s16 = sand.u32 1, %s756_s19   ;;  %p1053_p5 = scmp.ne.s32.totalorder %s1047_s23, 0 }
  0x58   : > { %733 = vsyncadd (%p1052_p0), [#allocation8], 4294967280  ;;  %s955_s17 = sshll.u32 %s223_s16, 3  ;;  %s224_s18 = scalar_lea.sflag [#allocation6], %s223_s16 }
  0x59   : > { %s227_s26 = scalar_lea.vmem [#allocation9], %s955_s17 }
  0x5a   : > { %735 = dma.done.wait (%p1053_p5), %s224_s18, 128  }
  0x5b   : > { %737 = vsyncadd (%p1053_p5), %s224_s18, 4294967168  ;;  %p1054_p6 = pmov %p1052_p0 }
  0x5c   : > { %p1055_p8 = pmov %p1052_p0 }
  0x5d   : > { %739 = dma.done.wait (%p1054_p6), [#allocation11], 256  }
  0x5e   : > { %741 = vsyncadd (%p1055_p8), [#allocation11], 4294967040 }
  0x5f   : > { %236 = sfence }
  0x60   : > { %s966_s24 = sld [smem:[#allocation5]]  ;;  %s490_s27 = sld [smem:[#allocation5 + $0x1]] }
  0x61   : > { %p1056_p4 = scmp.ne.s32.totalorder %s823_s22, 0 }
  0x62   : > { %v262_v0 = vld [vmem:[#allocation10] sm:$0xff] (!%p1056_p4)  ;;  %v266_v1 = vlaneseq (!%p1056_p4)  ;;  %v263_v2 = vld [vmem:[#allocation10 + $0x8] sm:$0xff] (!%p1056_p4)  ;;  %v264_v5 = vld [vmem:[%s1042_s3] sm:$0x1] (!%p1056_p4)  ;;  %vm260_vm0 = vcmask (!%p1056_p4), 7168   ;;  %v771_v31 = vmov (!%p1056_p4), 0.0  }
  0x63   : > { %259 = sbr.rel (%p1056_p4) target bundleno = 429 (0x1ad), region = 52  ;;  %v298_v3 = vadd.f32 (!%p1056_p4), %v263_v2, %v262_v0  ;;  %v306_v19 = vmul.f32 (!%p1056_p4), 0.9, %v264_v5  ;;  %261 = vst.msk [vmem:[#allocation4] sm:$0xff] (!%p1056_p4), %vm260_vm0, %v771_v31 }
  0x64   : > { %v267_v4 = vshrl.u32 (!%p1056_p4), %v266_v1, 7 }
  0x65   : > { %v299_v6 = vrot.slane (!%p1056_p4), %v298_v3, 4 }
  0x66   : > { %v268_v7 = vsub.s32 (!%p1056_p4), 0, %v267_v4  ;;  %v273_v10 = vstv (!%p1056_p4), %s490_s27 }
  0x67   : > { %v300_v8 = vadd.f32 (!%p1056_p4), %v299_v6, %v298_v3 }
  0x68   : > { %v269_v9 = vrot.slane (!%p1056_p4), %v264_v5, %v268_v7 }
  0x69   : > { %v301_v11 = vrot.slane (!%p1056_p4), %v300_v8, 2 }
  0x6a   : > { %v271_v12 = vsub.f32 %v262_v0, %v269_v9  ;;  %v272_v13 = vsub.f32 %v263_v2, %v269_v9 }
  0x6b   : > { %v302_v14 = vadd.f32 %v301_v11, %v300_v8 }
  0x6c   : > { %v274_v15 = vmul.f32 %v273_v10, %v271_v12  ;;  %v275_v17 = vmul.f32 %v273_v10, %v272_v13 }
  0x6d   : > { %v303_v16 = vrot.slane %v302_v14, 1 }
  0x6e   : > { %276 = vmax.xlane.f32.xlu0 %v274_v15 }
  0x6f   : > { %v304_v18 = vadd.f32 %v303_v16, %v302_v14 }
  0x71   : > { %v305_v20 = vmul.f32 0.0625, %v304_v18 }
  0x72   : > { %278 = vmax.xlane.f32.xlu0 %v275_v17 }
  0x73   : > { %v307_v21 = vmul.f32 0.1, %v305_v20 }
  0x75   : > { %v308_v22 = vadd.f32 %v307_v21, %v306_v19 }
  0x77   : > { %309 = vst [vmem:[#allocation13] sm:$0x1] %v308_v22 }
  0xfb   : > { %v277_v23 = vpop.xlane.xlu0 %276 }
  0xfc   : > { %v280_v24 = vsub.f32 %v274_v15, %v277_v23 }
  0xfe   : > { %v282_v25 = vmul.f32 1.442695, %v280_v24 }
  0xff   : > { %v279_v26 = vpop.xlane.xlu0 %278 }
 0x100   : > { %579 = vpow2.f32 %v282_v25  ;;  %v281_v27 = vsub.f32 %v275_v17, %v279_v26 }
 0x102   : > { %v284_v28 = vmul.f32 1.442695, %v281_v27 }
 0x104   : > { %581 = vpow2.f32 %v284_v28 }
 0x10a   : > { %v580_v29 = vpop.eup %579 }
 0x10b   : > { %286 = vadd.xlane.f32.xlu1 %v580_v29 }
 0x10e   : > { %v582_v30 = vpop.eup %581 }
 0x10f   : > { %288 = vadd.xlane.f32.xlu1 %v582_v30 }
 0x198   : > { %v287_v32 = vpop.xlane.xlu1 %286 }
 0x199   : > { %583 = vrcp.f32 %v287_v32 }
 0x19c   : > { %v289_v33 = vpop.xlane.xlu1 %288 }
 0x19d   : > { %585 = vrcp.f32 %v289_v33 }
 0x1a3   : > { %v584_v34 = vpop.eup %583 }
 0x1a4   : > { %v292_v35 = vmul.f32 %v584_v34, %v580_v29 }
 0x1a6   : > { %294 = vst [vmem:[#allocation2] sm:$0xff] %v292_v35 }
 0x1a7   : > { %v586_v36 = vpop.eup %585 }
 0x1a8   : > { %v293_v37 = vmul.f32 %v586_v36, %v582_v30 }
 0x1aa   : > { %295 = vst [vmem:[#allocation2 + $0x8] sm:$0xff] %v293_v37  ;;  %v296_v38 = vadd.f32 %v293_v37, %v292_v35 }
 0x1ac   : > { %297 = vst [vmem:[#allocation3] sm:$0xff] %v296_v38 }
 0x1ad PF: > { %v310_v39 = vld [vmem:[%s227_s26] sm:$0xff]  ;;  %v311_v40 = vstv %s966_s24  ;;  %p1057_p10 = scmp.ne.s32.totalorder %s823_s22, 0 }
 0x1ae   : > { %v312_v41 = vmul.f32 %v311_v40, %v310_v39  ;;  %v327_v52 = vld [vmem:[#allocation4] sm:$0xff] (!%p1057_p10)  ;;  %vm333_vm1 = vcmask (!%p1057_p10), 7168  }
 0x1b0   : > { %313 = vmax.xlane.f32.xlu0 %v312_v41 }
 0x1b1   : > { %v326_v50 = vld [vmem:[#allocation2 + $0x8] sm:$0xff] (!%p1057_p10) }
 0x1b2   : > { %v328_v51 = vmul.f32 (!%p1057_p10), %v326_v50, %v312_v41 }
 0x23d   : > { %v314_v42 = vpop.xlane.xlu0 %313 }
 0x23e   : > { %v315_v43 = vsub.f32 %v312_v41, %v314_v42 }
 0x240   : > { %v316_v44 = vmul.f32 1.442695, %v315_v43 }
 0x242   : > { %587 = vpow2.f32 %v316_v44 }
 0x24c   : > { %v588_v45 = vpop.eup %587 }
 0x24d   : > { %318 = vadd.xlane.f32.xlu0 %v588_v45 }
 0x251   : > { %329 = vadd.xlane.f32.xlu0 (!%p1057_p10), %v328_v51 }
 0x2da   : > { %v319_v46 = vpop.xlane.xlu0 %318 }
 0x2db   : > { %589 = vlog2.f32 %v319_v46 }
 0x2de   : > { %v330_v53 = vpop.xlane.xlu0 (!%p1057_p10), %329 }
 0x2e2   : > { %325 = sbr.rel (%p1057_p10) target bundleno = 751 (0x2ef), region = 56 }
 0x2e5   : > { %v590_v47 = vpop.eup %589 }
 0x2e6   : > { %v321_v48 = vmul.f32 0.6931472, %v590_v47 }
 0x2e8   : > { %v322_v49 = vadd.f32 %v321_v48, %v314_v42 }
 0x2ea   : > { %v331_v54 = vsub.f32 %v322_v49, %v330_v53 }
 0x2ec   : > { %v332_v55 = vadd.f32 %v331_v54, %v327_v52 }
 0x2ee   : > { %334 = vst.msk [vmem:[#allocation4] sm:$0xff] %vm333_vm1, %v332_v55 }
 0x2ef PF: > { %p493_p7 = scmp.ne.s32.totalorder %s823_s22, 1 }
 0x2f0   : > { %v339_v56 = vld [vmem:[#allocation2] sm:$0xff] (!%p493_p7)  ;;  %vm346_vm2 = vcmask (!%p493_p7), 7168  }
 0x2f1   : > { %338 = sbr.rel (%p493_p7) target bundleno = 902 (0x386), region = 60  ;;  %v341_v57 = vmul.f32 (!%p493_p7), %v339_v56, %v312_v41 }
 0x2f3   : > { %342 = vadd.xlane.f32.xlu0 (!%p493_p7), %v341_v57 }
 0x2f5   : > { %v340_v58 = vld [vmem:[#allocation4] sm:$0xff] (!%p493_p7) }
 0x380   : > { %v343_v59 = vpop.xlane.xlu0 %342 }
 0x381   : > { %v344_v60 = vsub.f32 %v322_v49, %v343_v59 }
 0x383   : > { %v345_v61 = vadd.f32 %v344_v60, %v340_v58 }
 0x385   : > { %347 = vst.msk [vmem:[#allocation4] sm:$0xff] %vm346_vm2, %v345_v61 }
 0x386 PF: > { %p494_p9 = scmp.lt.s32.totalorder %s823_s22, 2 }
 0x387   : > { %v354_v62 = vld [vmem:[#allocation3] sm:$0xff] (!%p494_p9)  ;;  %v353_v0 = vmul.f32 (!%p494_p9), 2.0, %v322_v49  ;;  %vm360_vm3 = vcmask (!%p494_p9), 7168  }
 0x388   : > { %351 = sbr.rel (%p494_p9) target bundleno = 1053 (0x41d), region = 64  ;;  %v355_v63 = vmul.f32 (!%p494_p9), %v354_v62, %v312_v41 }
 0x38a   : > { %356 = vadd.xlane.f32.xlu0 (!%p494_p9), %v355_v63 }
 0x38c   : > { %v352_v1 = vld [vmem:[#allocation4] sm:$0xff] (!%p494_p9) }
 0x417   : > { %v357_v2 = vpop.xlane.xlu0 %356 }
 0x418   : > { %v358_v3 = vsub.f32 %v353_v0, %v357_v2 }
 0x41a   : > { %v359_v4 = vadd.f32 %v358_v3, %v352_v1 }
 0x41c   : > { %361 = vst.msk [vmem:[#allocation4] sm:$0xff] %vm360_vm3, %v359_v4 }
 0x41d PF: > { %p495_p11 = scmp.ne.s32.totalorder %s823_s22, 3 }
 0x41e   : > { %vm367_vm4 = vcmask (!%p495_p11), 7168   ;;  %vm376_vm5 = vcmask (!%p495_p11), 0  }
 0x41f   : > { %365 = sbr.rel (%p495_p11) target bundleno = 1076 (0x434), region = 68 }
 0x423   : > { %v366_v5 = vld [vmem:[#allocation4] sm:$0xff] (!%p495_p11) }
 0x424   : > { %v368_v6 = vsel (!%p495_p11), %vm367_vm4, %v366_v5, 0.0 }
 0x425   : > { %v369_v7 = vrot.slane (!%p495_p11), %v368_v6, 4 }
 0x427   : > { %v370_v8 = vadd.f32 %v369_v7, %v368_v6 }
 0x429   : > { %v371_v9 = vrot.slane %v370_v8, 2 }
 0x42b   : > { %v372_v10 = vadd.f32 %v371_v9, %v370_v8 }
 0x42d   : > { %v373_v11 = vrot.slane %v372_v10, 1 }
 0x42f   : > { %v374_v12 = vadd.f32 %v373_v11, %v372_v10 }
 0x431   : > { %v375_v13 = vmul.f32 0.020833334, %v374_v12 }
 0x433   : > { %377 = vst.msk [vmem:[#allocation12] sm:$0x1] %vm376_vm5, %v375_v13 }
 0x434 PF: > { %p536_p13 = scmp.eq.s32.totalorder %s823_s22, 3  ;;  %s772_s25 = smov [#allocation12]  }
 0x435   : > { %s385_s21 = sshll.u32 %s772_s25, 4  ;;  %s773_s30 = smov [#allocation13]   ;;  %s386_s21 = int_to_ptr.vmem [resolvable:$true] %s385_s21 }
 0x436   : > { %s396_s6 = sshll.u32 %s773_s30, 4  ;;  %s662_s7 = scalar_lea.vmem %s386_s21, 16  ;;  %s397_s6 = int_to_ptr.vmem [resolvable:$true] %s396_s6 }
 0x437   : > { %p663_p2 = scmp.ne.s32.totalorder %s386_s21, %s662_s7  ;;  %s668_s8 = scalar_lea.vmem %s386_s21, 32 }
 0x438   : > { %p669_p12 = scmp.lt.s32.totalorder %s386_s21, %s386_s21  ;;  %p670_p0 = scmp.lt.s32.totalorder %s668_s8, %s662_s7 }
 0x439   : > { %p664_p3 = pnand %p663_p2, %p536_p13 }
 0x43a   : > { %p671_p5 = por %p670_p0, %p669_p12 }
 0x43b   : > { %p665_p1 = pneg %p664_p3 }
 0x43d   : > { %p672_p6 = pnand %p671_p5, %p665_p1 }
 0x43f   : > { %675 = shalt.err (!%p672_p6)
}
 0x440   : > { %s676_s11 = scalar_lea.hbm %s1043_s4, 16 }
 0x441   : > { %p677_p8 = scmp.ne.s32.totalorder %s1043_s4, %s676_s11  ;;  %p682_p7 = scmp.lt.u32.totalorder %s676_s11, %s1043_s4 }
 0x443   : > { %p678_p4 = pnand %p677_p8, %p536_p13 }
 0x445   : > { %p679_p10 = pneg %p678_p4 }
 0x447   : > { %p684_p9 = pnand %p682_p7, %p679_p10 }
 0x449   : > { %687 = shalt.err (!%p684_p9)
}
 0x44a   : > { %513 = dma.vmem_to_hbm [thread:$0]  (%p536_p13), %s386_s21, 16, %s1043_s4, [#allocation7]  }
 0x44b   : > { %s688_s26 = scalar_lea.vmem %s397_s6, 16  ;;  %s694_s24 = scalar_lea.vmem %s397_s6, 32 }
 0x44c   : > { %p689_p11 = scmp.ne.s32.totalorder %s397_s6, %s688_s26  ;;  %p695_p1 = scmp.lt.s32.totalorder %s397_s6, %s397_s6 }
 0x44d   : > { %p696_p12 = scmp.lt.s32.totalorder %s694_s24, %s688_s26 }
 0x44e   : > { %p690_p2 = pnand %p689_p11, %p536_p13 }
 0x44f   : > { %p697_p0 = por %p696_p12, %p695_p1 }
 0x450   : > { %p691_p3 = pneg %p690_p2 }
 0x452   : > { %p698_p5 = pnand %p697_p0, %p691_p3 }
 0x454   : > { %701 = shalt.err (!%p698_p5)
}
 0x455   : > { %s702_s29 = scalar_lea.hbm %s1044_s5, 16 }
 0x456   : > { %p703_p6 = scmp.ne.s32.totalorder %s1044_s5, %s702_s29  ;;  %p708_p10 = scmp.lt.u32.totalorder %s702_s29, %s1044_s5 }
 0x458   : > { %p704_p8 = pnand %p703_p6, %p536_p13 }
 0x45a   : > { %p705_p4 = pneg %p704_p8 }
 0x45c   : > { %p710_p7 = pnand %p708_p10, %p705_p4 }
 0x45e   : > { %713 = shalt.err (!%p710_p7)
}
 0x45f   : > { %515 = dma.vmem_to_hbm [thread:$0]  (%p536_p13), %s397_s6, 16, %s1044_s5, [#allocation14]  }
 0x460   : > { %743 = dma.done.wait (%p536_p13), [#allocation7], 16  }
 0x461   : > { %745 = vsyncadd (%p536_p13), [#allocation7], 4294967280 }
 0x462   : > { %747 = dma.done.wait (%p536_p13), [#allocation14], 16  }
 0x463   : > { %749 = vsyncadd (%p536_p13), [#allocation14], 4294967280 }
 0x464 PF: > { %p20_p9 = scmp.ge.s32.totalorder %s851_s28, 6   ;;  %s1058_s18 = smov %s756_s19 }
 0x465   : > { %s1059_s19 = smov %s760_s20  ;;  %s1060_s20 = smov %s907_s13 }
 0x466   : > { %s1061_s21 = smov %s851_s28  ;;  %22 = sbr.rel (!%p20_p9) target bundleno = 7 (0x7), region = 110 }
 0x46d   :  { %413 = vsyncpa [#allocation6], 1 }
 0x46e   :  { %415 = vsyncpa [#allocation6 + $0x1], 1 }
 0x46f   :  { %416 = vsyncpa [#allocation11], 1 }
 0x470   :  { %417 = vsyncpa [#allocation7], 1 }
 0x471   :  { %419 = vsyncpa [#allocation7 + $0x1], 1 }
 0x472   :  { %420 = vsyncpa [#allocation14], 1 }
 0x473   :  { %421 = vsyncpa [#allocation8], 1 }
 0x474   :  { %423 = vsyncpa [#allocation8 + $0x1], 1 }

</bundles_post_ra>
